<compile_context>
chip_gen: v7x
topology: tpu7x:2x2x1
jax: 0.10.0
libtpu: 0.0.40
codegen_flags: <defaults>
</compile_context>

<pallas_src>
import functools

import jax
import jax.numpy as jnp
from jax.experimental import pallas as pl
from jax.experimental.pallas import tpu as pltpu


def actor_kernel(x_ref, w1_ref, b1_ref, w2_ref, b2_ref, out_ref):
    # x_ref:  [TB, in]  batch-major input tile
    # w1_ref: [64, in]  (PyTorch [out, in] layout), b1_ref: [64, 1]
    # w2_ref: [A, 64],  b2_ref: [A, 1]
    # out_ref:[TB, A]   batch-major probabilities

    # fc1 + relu, transposed (batch on lanes): h^T = W1 @ x^T : [64, TB].
    # Contract the feature axes directly so no wrapper-side transpose of x
    # is ever needed.
    hT = jax.lax.dot_general(
        w1_ref[...], x_ref[...],
        dimension_numbers=(((1,), (1,)), ((), ())),
        preferred_element_type=jnp.float32,
    )
    hT = jnp.maximum(hT + b1_ref[...], 0.0)        # [64,1] bias bcast over lanes

    # fc2: logits^T = W2 @ h^T : [A, TB]
    logitsT = jnp.dot(w2_ref[...], hT, preferred_element_type=jnp.float32)
    logitsT = logitsT + b2_ref[...]

    # Numerically-stable softmax over the action axis (axis 0 = sublanes);
    # exp stays lane-dense on [A, TB].
    m = jnp.max(logitsT, axis=0, keepdims=True)
    e = jnp.exp(logitsT - m)
    denom = jnp.sum(e, axis=0, keepdims=True)
    # EUP reciprocal + one Newton step: rel. error ~4e-9, VPU divide avoided.
    r = pl.reciprocal(denom, approx=True)
    r = r * (2.0 - denom * r)
    probsT = e * r                                  # [A, TB]

    # Batch-major store: one small in-kernel transpose (idle XLU) instead of
    # an extra wrapper-side HBM pass over the output. A=16 lanes -> masked
    # vst on the (small) output stream only.
    out_ref[...] = probsT.T.astype(out_ref.dtype)


@functools.partial(jax.jit, static_argnames=("block_b",))
def actor_forward(x, w1, b1, w2, b2, *, block_b=2048):
    """x: [B, input_size]; w1: [64, input_size]; b1: [64, 1];
    w2: [num_actions, 64]; b2: [num_actions, 1] -> probs [B, num_actions]."""
    B, input_size = x.shape
    num_actions, hidden = w2.shape

    # Tile heuristic: lane-dense multiple of 128, at most block_b, never much
    # larger than B, and (when B allows) at least 2 tiles so v7x's two
    # TensorCores both get work under dimension_semantics=("parallel",).
    bb = min(block_b, pl.cdiv(B, 128) * 128)
    if B > 128:
        bb = min(bb, pl.cdiv(B, 2 * 128) * 128)     # keep grid >= 2
    bb = max(bb, 128)
    grid = (pl.cdiv(B, bb),)

    cost = pl.CostEstimate(
        flops=2 * B * input_size * hidden + 2 * B * hidden * num_actions,
        transcendentals=B * num_actions,
        bytes_accessed=4 * (B * input_size + B * num_actions
                            + hidden * input_size + hidden
                            + num_actions * hidden + num_actions),
    )

    return pl.pallas_call(
        actor_kernel,
        out_shape=jax.ShapeDtypeStruct((B, num_actions), jnp.float32),
        grid=grid,
        in_specs=[
            pl.BlockSpec((bb, input_size), lambda i: (i, 0)),        # batch tile
            pl.BlockSpec((hidden, input_size), lambda i: (0, 0)),    # VMEM-resident
            pl.BlockSpec((hidden, 1), lambda i: (0, 0)),             # VMEM-resident
            pl.BlockSpec((num_actions, hidden), lambda i: (0, 0)),   # VMEM-resident
            pl.BlockSpec((num_actions, 1), lambda i: (0, 0)),        # VMEM-resident
        ],
        out_specs=pl.BlockSpec((bb, num_actions), lambda i: (i, 0)),
        compiler_params=pltpu.CompilerParams(
            dimension_semantics=("parallel",),
        ),
        cost_estimate=cost,
    )(x, w1, b1, w2, b2)


def init_params(key, input_size, num_actions, hidden=64):
    """Deterministic init matching nn.Linear's U(-1/sqrt(fan_in), 1/sqrt(fan_in)).

    Weights stay in PyTorch-native [out, in] layout (the kernel consumes them
    directly as the LHS of the transposed matmuls); biases as [out, 1]."""
    k1, k2, k3, k4 = jax.random.split(key, 4)
    bound1 = 1.0 / jnp.sqrt(jnp.float32(input_size))
    bound2 = 1.0 / jnp.sqrt(jnp.float32(hidden))
    w1 = jax.random.uniform(k1, (hidden, input_size), jnp.float32, -bound1, bound1)
    b1 = jax.random.uniform(k2, (hidden, 1), jnp.float32, -bound1, bound1)
    w2 = jax.random.uniform(k3, (num_actions, hidden), jnp.float32, -bound2, bound2)
    b2 = jax.random.uniform(k4, (num_actions, 1), jnp.float32, -bound2, bound2)
    return w1, b1, w2, b2


if __name__ == "__main__":
    key = jax.random.PRNGKey(0)
    k_in, k_par = jax.random.split(key)

    B = 300              # deliberately not a multiple of the batch tile
    input_size = 32      # observation size
    num_actions = 16

    x = jax.random.normal(k_in, (B, input_size), dtype=jnp.float32)
    w1, b1, w2, b2 = init_params(k_par, input_size, num_actions)

    probs = actor_forward(x, w1, b1, w2, b2)
    probs = jax.block_until_ready(probs)

    # Pure-JAX reference of the same math (batch-major, PyTorch semantics).
    h_ref = jnp.maximum(x @ w1.T + b1.T, 0.0)
    logits_ref = h_ref @ w2.T + b2.T
    ref = jax.nn.softmax(logits_ref, axis=-1)

    assert probs.shape == (B, num_actions)
    assert jnp.allclose(probs, ref, atol=1e-5, rtol=1e-5)
    assert jnp.allclose(jnp.sum(probs, axis=-1), 1.0, atol=1e-5)

    print("KERNEL_OK")
</pallas_src>

<mosaic_0001>
module attributes {stable_mosaic.version = 11 : i64} {
  func.func @actor_kernel(%arg0: i32, %arg1: memref<256x32xf32, #tpu.memory_space<vmem>>, %arg2: memref<64x32xf32, #tpu.memory_space<vmem>>, %arg3: memref<64x1xf32, #tpu.memory_space<vmem>>, %arg4: memref<16x64xf32, #tpu.memory_space<vmem>>, %arg5: memref<16x1xf32, #tpu.memory_space<vmem>>, %arg6: memref<256x16xf32, #tpu.memory_space<vmem>>) attributes {dimension_semantics = [#tpu.dimension_semantics<parallel>], iteration_bounds = array<i64: 2>, scalar_prefetch = 0 : i64, scratch_operands = 0 : i64, tpu.core_type = #tpu.core_type<tc>, window_params = [{transform_indices = @transform_0, window_bounds = array<i64: 256, 32>}, {pipeline_mode = #tpu.pipeline_mode<synchronous>, transform_indices = @transform_1, window_bounds = array<i64: 64, 32>}, {pipeline_mode = #tpu.pipeline_mode<synchronous>, transform_indices = @transform_2, window_bounds = array<i64: 64, 1>}, {pipeline_mode = #tpu.pipeline_mode<synchronous>, transform_indices = @transform_3, window_bounds = array<i64: 16, 64>}, {pipeline_mode = #tpu.pipeline_mode<synchronous>, transform_indices = @transform_4, window_bounds = array<i64: 16, 1>}, {transform_indices = @transform_5, window_bounds = array<i64: 256, 16>}]} {
    %c0 = arith.constant 0 : index
    %c0_0 = arith.constant 0 : index
    %0 = vector.load %arg2[%c0, %c0_0] : memref<64x32xf32, #tpu.memory_space<vmem>>, vector<64x32xf32>
    %c0_1 = arith.constant 0 : index
    %c0_2 = arith.constant 0 : index
    %1 = vector.load %arg1[%c0_1, %c0_2] : memref<256x32xf32, #tpu.memory_space<vmem>>, vector<256x32xf32>
    %cst = arith.constant dense<0.000000e+00> : vector<64x256xf32>
    %2 = tpu.matmul %0, %1, %cst {dimension_numbers = #tpu.dot_dimension_numbers<[1], [1], [0], [0], [0, 0, 1, 0], [], []>} : vector<64x32xf32>, vector<256x32xf32>, vector<64x256xf32> -> vector<64x256xf32>
    %c0_3 = arith.constant 0 : index
    %c0_4 = arith.constant 0 : index
    %3 = vector.load %arg3[%c0_3, %c0_4] : memref<64x1xf32, #tpu.memory_space<vmem>>, vector<64x1xf32>
    %4 = vector.broadcast %3 : vector<64x1xf32> to vector<64x256xf32>
    %5 = arith.addf %2, %4 : vector<64x256xf32>
    %cst_5 = arith.constant 0.000000e+00 : f32
    %6 = vector.broadcast %cst_5 : f32 to vector<64x256xf32>
    %7 = arith.maximumf %5, %6 : vector<64x256xf32>
    %c0_6 = arith.constant 0 : index
    %c0_7 = arith.constant 0 : index
    %8 = vector.load %arg4[%c0_6, %c0_7] : memref<16x64xf32, #tpu.memory_space<vmem>>, vector<16x64xf32>
    %cst_8 = arith.constant dense<0.000000e+00> : vector<16x256xf32>
    %9 = tpu.matmul %8, %7, %cst_8 {dimension_numbers = #tpu.dot_dimension_numbers<[1], [0], [0], [1], [0, 0, 1, 1], [], []>} : vector<16x64xf32>, vector<64x256xf32>, vector<16x256xf32> -> vector<16x256xf32>
    %c0_9 = arith.constant 0 : index
    %c0_10 = arith.constant 0 : index
    %10 = vector.load %arg5[%c0_9, %c0_10] : memref<16x1xf32, #tpu.memory_space<vmem>>, vector<16x1xf32>
    %11 = vector.broadcast %10 : vector<16x1xf32> to vector<16x256xf32>
    %12 = arith.addf %9, %11 : vector<16x256xf32>
    %cst_11 = arith.constant dense<0xFF800000> : vector<256xf32>
    %13 = vector.multi_reduction <maximumf>, %12, %cst_11 [0] : vector<16x256xf32> to vector<256xf32>
    %14 = vector.shape_cast %13 : vector<256xf32> to vector<1x256xf32>
    %15 = vector.broadcast %14 : vector<1x256xf32> to vector<16x256xf32>
    %16 = arith.subf %12, %15 : vector<16x256xf32>
    %17 = math.exp %16 : vector<16x256xf32>
    %cst_12 = arith.constant dense<0.000000e+00> : vector<256xf32>
    %18 = vector.multi_reduction <add>, %17, %cst_12 [0] : vector<16x256xf32> to vector<256xf32>
    %19 = vector.shape_cast %18 : vector<256xf32> to vector<1x256xf32>
    %20 = tpu.reciprocal %19 {approx = true} : vector<1x256xf32> -> vector<1x256xf32>
    %21 = arith.mulf %19, %20 : vector<1x256xf32>
    %cst_13 = arith.constant 2.000000e+00 : f32
    %22 = vector.broadcast %cst_13 : f32 to vector<1x256xf32>
    %23 = arith.subf %22, %21 : vector<1x256xf32>
    %24 = arith.mulf %20, %23 : vector<1x256xf32>
    %25 = vector.broadcast %24 : vector<1x256xf32> to vector<16x256xf32>
    %26 = arith.mulf %17, %25 : vector<16x256xf32>
    %27 = tpu.transpose %26, [1, 0] : vector<16x256xf32> -> vector<256x16xf32>
    %c0_14 = arith.constant 0 : index
    %c0_15 = arith.constant 0 : index
    %28 = vector.load %arg6[%c0_14, %c0_15] : memref<256x16xf32, #tpu.memory_space<vmem>>, vector<256x16xf32>
    tpu.vector_store %arg6[%c0_14, %c0_15], %27 {strides = array<i32>} : memref<256x16xf32, #tpu.memory_space<vmem>>, vector<256x16xf32>,
    return
  }
  func.func @transform_0(%arg0: i32) -> (i32, i32) {
    %c0_i32 = arith.constant 0 : i32
    %c0_i32_0 = arith.constant 0 : i32
    return %arg0, %c0_i32 : i32, i32
  }
  func.func @transform_1(%arg0: i32) -> (i32, i32) {
    %c0_i32 = arith.constant 0 : i32
    %c0_i32_0 = arith.constant 0 : i32
    %c0_i32_1 = arith.constant 0 : i32
    return %c0_i32, %c0_i32_0 : i32, i32
  }
  func.func @transform_2(%arg0: i32) -> (i32, i32) {
    %c0_i32 = arith.constant 0 : i32
    %c0_i32_0 = arith.constant 0 : i32
    %c0_i32_1 = arith.constant 0 : i32
    return %c0_i32, %c0_i32_0 : i32, i32
  }
  func.func @transform_3(%arg0: i32) -> (i32, i32) {
    %c0_i32 = arith.constant 0 : i32
    %c0_i32_0 = arith.constant 0 : i32
    %c0_i32_1 = arith.constant 0 : i32
    return %c0_i32, %c0_i32_0 : i32, i32
  }
  func.func @transform_4(%arg0: i32) -> (i32, i32) {
    %c0_i32 = arith.constant 0 : i32
    %c0_i32_0 = arith.constant 0 : i32
    %c0_i32_1 = arith.constant 0 : i32
    return %c0_i32, %c0_i32_0 : i32, i32
  }
  func.func @transform_5(%arg0: i32) -> (i32, i32) {
    %c0_i32 = arith.constant 0 : i32
    %c0_i32_0 = arith.constant 0 : i32
    return %arg0, %c0_i32 : i32, i32
  }
}

</mosaic_0001>

<bundles_post_ra>
// kernel: actor_forward.1
= control target key start
LH: loop header
LB: loop body
LE: loop exit
PB: predicated region body
PF: predicated region fallthrough
CT: control target
= control target key end

     0   :  { %s1575_s18 = smov 0   ;;  %s1577_s19 = smov 0   ;;  %s1972_s0 = inlined_call_operand.vmem [shape: f32[300,32], index: 0, kind: input, shape index: {}]   ;;  %s1973_s1 = inlined_call_operand.vmem [shape: f32[64,32], index: 1, kind: input, shape index: {}]   ;;  %s1974_s2 = inlined_call_operand.vmem [shape: f32[64,1], index: 2, kind: input, shape index: {}]   ;;  %s1975_s3 = inlined_call_operand.vmem [shape: f32[16,64], index: 3, kind: input, shape index: {}]   ;;  %s1976_s4 = inlined_call_operand.vmem [shape: f32[16,1], index: 4, kind: input, shape index: {}]   ;;  %s1977_s5 = inlined_call_operand.vmem [shape: f32[300,16], index: 5, kind: output, shape index: {}]  }
   0x1   :  { %s1579_s20 = smov 0  }
   0x2 LB: > { %s1588_s21 = sadd.s32 4294967295, %s1509_s20   ;;  %s1590_s22 = sadd.s32 1, %s1509_s20   ;;  %s1509_s20 = sphi %s1579_s20, %s1988_s20   ;;  %s1505_s19 = sphi %s1577_s19, %s1987_s19   ;;  %s1501_s18 = sphi %s1575_s18, %s1986_s18  }
   0x3   : > { %s129_s23 = ssub.s32 %s1509_s20, %s1590_s22  ;;  %s132_s24 = sadd.s32 1, %s1505_s19 }
   0x4   : > { %p130_p0 = scmp.eq.s32.totalorder %s129_s23, 0  ;;  %p142_p1 = scmp.ne.s32.totalorder %s1505_s19, %s1501_s18 }
   0x5   : > { %p143_p2 = scmp.eq.s32.totalorder %s1588_s21, 1  ;;  %p1173_p3 = scmp.ge.s32.totalorder %s1509_s20, 1 }
   0x6   : > { %s1598_s25 = scalar_select %p130_p0, %s1505_s19, %s132_s24  }
   0x7   : > { %p1600_p4 = por %p143_p2, %p142_p1  ;;  %p196_p5 = scmp.lt.s32.totalorder %s1509_s20, 3 }
   0x9   : > { %p197_p6 = pnand %p1173_p3, %p196_p5 }
   0xa   : > { %s1605_s27 = sshll.u32 (!%p197_p6), %s1588_s21, 5  ;;  %vm334_vm0 = vcmask (!%p197_p6), 261120   ;;  %v1610_v0 = vld [vmem:[%s1973_s1] sm:$0xff] (!%p197_p6)  ;;  %v1543_v1 = vmov (!%p197_p6), 0   ;;  %v288_v3 = vld [vmem:[%s1974_s2 + $0x10] sm:$0xff] (!%p197_p6)  ;;  %v287_v4 = vld [vmem:[%s1974_s2 + $0x8] sm:$0xff] (!%p197_p6) }
   0xb   : > { %200 = sbr.rel (%p197_p6) target bundleno = 869 (0x365), region = 40  ;;  %p232_p7 = scmp.lt.s32.totalorder (!%p197_p6), %s1605_s27, 37  ;;  %1271 = vmatprep.mubr.msk.f32.mxu0 (!%p197_p6), %vm334_vm0, %v1610_v0  ;;  %1441 = vset.pattern.permute.xlu0 (!%p197_p6), %v1543_v1  ;;  %v286_v2 = vld [vmem:[%s1974_s2] sm:$0xff] (!%p197_p6)  ;;  %v289_v5 = vld [vmem:[%s1974_s2 + $0x18] sm:$0xff] (!%p197_p6)  ;;  %vm1635_vm1 = vmpackc.low (!%p197_p6), %vm334_vm0, %vm334_vm0  ;;  %vm598_vm2 = vcmask (!%p197_p6), 523264   ;;  %vm798_vm3 = vcmask (!%p197_p6), 130048  }
   0xc   : > { %1442 = vset.pattern.permute.xlu1 (!%p197_p6), %v1543_v1  ;;  %296 = vperm.xlu0 (!%p197_p6), %1441, %v286_v2   ;;  %v290_v16 = vld [vmem:[%s1974_s2 + $0x20] sm:$0xff] (!%p197_p6)  ;;  %v291_v17 = vld [vmem:[%s1974_s2 + $0x28] sm:$0xff] (!%p197_p6)  ;;  %v292_v22 = vld [vmem:[%s1974_s2 + $0x30] sm:$0xff] (!%p197_p6)  ;;  %s224_s12 = sand.u32 (!%p197_p6), 1, %s1501_s18  }
   0xd   : > { %306 = vperm.xlu1 (!%p197_p6), %1442, %v288_v3   ;;  %v293_v23 = vld [vmem:[%s1974_s2 + $0x38] sm:$0xff] (!%p197_p6)  ;;  %v586_v26 = vld [vmem:[%s1976_s4] sm:$0xff] (!%p197_p6)  ;;  %v587_v27 = vld [vmem:[%s1976_s4 + $0x8] sm:$0xff] (!%p197_p6)  ;;  %s1174_s13 = sshll.u32 (!%p197_p6), %s224_s12, 8 }
   0xe   : > { %v247_v61 = vld [vmem:[%s1973_s1 + $0x8] sm:$0xff] (!%p197_p6)  ;;  %v248_v62 = vld [vmem:[%s1973_s1 + $0x10] sm:$0xff] (!%p197_p6)  ;;  %v249_v63 = vld [vmem:[%s1973_s1 + $0x18] sm:$0xff] (!%p197_p6)  ;;  %s1767_s14 = scalar_lea.vmem (!%p197_p6), [#allocation2], %s1174_s13  }
   0xf   : > { %v251_v1 = vld [vmem:[%s1973_s1 + $0x28] sm:$0xff] (!%p197_p6)  ;;  %v252_v2 = vld [vmem:[%s1973_s1 + $0x30] sm:$0xff] (!%p197_p6)  ;;  %v253_v3 = vld [vmem:[%s1973_s1 + $0x38] sm:$0xff] (!%p197_p6) }
  0x10   : > { %301 = vperm.xlu0 (!%p197_p6), %1441, %v287_v4   ;;  %v1544_v4 = vmov (!%p197_p6), 0.0  }
  0x11   : > { %311 = vperm.xlu1 (!%p197_p6), %1442, %v289_v5   ;;  %669 = vmatprep.mubr.f32.mxu1 (!%p197_p6), %v1544_v4 }
  0x12   : > { %s233_s30 = scalar_select %p232_p7, %s1605_s27, 37 }
  0x13   : > { %s839_s18 = ssub.s32 (%p1600_p4), 38, %s1605_s27  ;;  %s1236_s15 = sshll.u32 (%p1600_p4), %s1588_s21, 8 }
  0x14   : > { %s1176_s10 = sshll.u32 %s233_s30, 3  ;;  %316 = vperm.xlu0 %1441, %v290_v16   ;;  %p840_p8 = scmp.lt.s32.totalorder (%p1600_p4), %s839_s18, 32 }
  0x15   : > { %s1631_s17 = scalar_lea.vmem %s1972_s0, %s1176_s10  ;;  %321 = vperm.xlu1 %1442, %v291_v17   ;;  %s1840_s20 = scalar_lea.vmem (%p1600_p4), %s1977_s5, %s1236_s15  }
  0x16   : > { %v270_v7 = vld [vmem:[%s1631_s17 + $0x80] sm:$0xff]  ;;  %v271_v8 = vld [vmem:[%s1631_s17 + $0x88] sm:$0xff]  ;;  %v272_v12 = vld [vmem:[%s1631_s17 + $0x90] sm:$0xff] }
  0x17   : > { %v254_v9 = vld [vmem:[%s1631_s17] sm:$0xff]  ;;  %v1287_v10 = vpack.c.bf16 %v271_v8, %v270_v7  ;;  %v255_v11 = vld [vmem:[%s1631_s17 + $0x8] sm:$0xff]  ;;  %v273_v13 = vld [vmem:[%s1631_s17 + $0x98] sm:$0xff] }
  0x18   : > { %v1290_v14 = vpack.c.bf16 %v255_v11, %v254_v9  ;;  %v1293_v15 = vpack.c.bf16 %v273_v13, %v272_v12  ;;  %v256_v18 = vld [vmem:[%s1631_s17 + $0x10] sm:$0xff]  ;;  %v257_v19 = vld [vmem:[%s1631_s17 + $0x18] sm:$0xff]  ;;  %v274_v20 = vld [vmem:[%s1631_s17 + $0xa0] sm:$0xff]  ;;  %326 = vperm.xlu0 %1441, %v292_v22  }
  0x19   : > { %1289 = vmatprep.subr.msk.bf16.mxu0 %vm1635_vm1, %v1287_v10  ;;  %v275_v21 = vld [vmem:[%s1631_s17 + $0xa8] sm:$0xff]  ;;  %v1296_v24 = vpack.c.bf16 %v257_v19, %v256_v18  ;;  %331 = vperm.xlu1 %1442, %v293_v23   ;;  %v258_v28 = vld [vmem:[%s1631_s17 + $0x20] sm:$0xff]  ;;  %v276_v30 = vld [vmem:[%s1631_s17 + $0xb0] sm:$0xff] }
  0x1a   : > { %1292 = vmatpush3.bf16.xpose.msk.msra.mxu0 %vm1635_vm1, %v1290_v14  ;;  %v1299_v25 = vpack.c.bf16 %v275_v21, %v274_v20  ;;  %v259_v29 = vld [vmem:[%s1631_s17 + $0x28] sm:$0xff]  ;;  %v277_v31 = vld [vmem:[%s1631_s17 + $0xb8] sm:$0xff]  ;;  %v260_v34 = vld [vmem:[%s1631_s17 + $0x30] sm:$0xff] }
  0x1b   : > { %1295 = vmatprep.subr.msk.bf16.mxu0 %vm1635_vm1, %v1293_v15  ;;  %v1302_v32 = vpack.c.bf16 %v259_v29, %v258_v28  ;;  %v1305_v33 = vpack.c.bf16 %v277_v31, %v276_v30  ;;  %v261_v35 = vld [vmem:[%s1631_s17 + $0x38] sm:$0xff]  ;;  %v278_v36 = vld [vmem:[%s1631_s17 + $0xc0] sm:$0xff]  ;;  %v279_v37 = vld [vmem:[%s1631_s17 + $0xc8] sm:$0xff] }
  0x1c   : > { %590 = vperm.xlu0 %1441, %v586_v26   ;;  %v1308_v38 = vpack.c.bf16 %v261_v35, %v260_v34  ;;  %v1311_v39 = vpack.c.bf16 %v279_v37, %v278_v36  ;;  %v262_v40 = vld [vmem:[%s1631_s17 + $0x40] sm:$0xff]  ;;  %v263_v41 = vld [vmem:[%s1631_s17 + $0x48] sm:$0xff]  ;;  %v280_v42 = vld [vmem:[%s1631_s17 + $0xd0] sm:$0xff] }
  0x1d   : > { %595 = vperm.xlu1 %1442, %v587_v27   ;;  %v281_v43 = vld [vmem:[%s1631_s17 + $0xd8] sm:$0xff]  ;;  %v1314_v44 = vpack.c.bf16 %v263_v41, %v262_v40  ;;  %v264_v46 = vld [vmem:[%s1631_s17 + $0x50] sm:$0xff]  ;;  %v282_v48 = vld [vmem:[%s1631_s17 + $0xe0] sm:$0xff] }
  0x1e   : > { %v1317_v45 = vpack.c.bf16 %v281_v43, %v280_v42  ;;  %v265_v47 = vld [vmem:[%s1631_s17 + $0x58] sm:$0xff]  ;;  %v283_v49 = vld [vmem:[%s1631_s17 + $0xe8] sm:$0xff]  ;;  %v266_v52 = vld [vmem:[%s1631_s17 + $0x60] sm:$0xff] }
  0x1f   : > { %v1320_v50 = vpack.c.bf16 %v265_v47, %v264_v46  ;;  %v1323_v51 = vpack.c.bf16 %v283_v49, %v282_v48  ;;  %v267_v53 = vld [vmem:[%s1631_s17 + $0x68] sm:$0xff]  ;;  %v284_v54 = vld [vmem:[%s1631_s17 + $0xf0] sm:$0xff]  ;;  %v285_v55 = vld [vmem:[%s1631_s17 + $0xf8] sm:$0xff] }
  0x20   : > { %v1326_v56 = vpack.c.bf16 %v267_v53, %v266_v52  ;;  %v1329_v57 = vpack.c.bf16 %v285_v55, %v284_v54  ;;  %v268_v58 = vld [vmem:[%s1631_s17 + $0x70] sm:$0xff]  ;;  %v269_v59 = vld [vmem:[%s1631_s17 + $0x78] sm:$0xff] }
  0x21   : > { %v1332_v60 = vpack.c.bf16 %v269_v59, %v268_v58 }
  0x22   : > { %1298 = vmatpush3.bf16.xpose.msk.msra.mxu0 %vm1635_vm1, %v1296_v24 }
  0x23   : > { %1301 = vmatprep.subr.msk.bf16.mxu0 %vm1635_vm1, %v1299_v25 }
  0x2a   : > { %1304 = vmatpush3.bf16.xpose.msk.msra.mxu0 %vm1635_vm1, %v1302_v32 }
  0x2b   : > { %1307 = vmatprep.subr.msk.bf16.mxu0 %vm1635_vm1, %v1305_v33 }
  0x32   : > { %1310 = vmatpush3.bf16.xpose.msk.msra.mxu0 %vm1635_vm1, %v1308_v38 }
  0x33   : > { %1313 = vmatprep.subr.msk.bf16.mxu0 %vm1635_vm1, %v1311_v39 }
  0x3a   : > { %1316 = vmatpush3.bf16.xpose.msk.msra.mxu0 %vm1635_vm1, %v1314_v44 }
  0x3b   : > { %1319 = vmatprep.subr.msk.bf16.mxu0 %vm1635_vm1, %v1317_v45 }
  0x42   : > { %1322 = vmatpush3.bf16.xpose.msk.msra.mxu0 %vm1635_vm1, %v1320_v50 }
  0x43   : > { %1325 = vmatprep.subr.msk.bf16.mxu0 %vm1635_vm1, %v1323_v51 }
  0x4a   : > { %1328 = vmatpush3.bf16.xpose.msk.msra.mxu0 %vm1635_vm1, %v1326_v56 }
  0x4b   : > { %1331 = vmatprep.subr.msk.bf16.mxu0 %vm1635_vm1, %v1329_v57 }
  0x52   : > { %1334 = vmatpush3.bf16.xpose.msk.msra.mxu0 %vm1635_vm1, %v1332_v60 }
  0x59   : > { %1272 = vmatmul.mubr.msk.f32.vlgmr.msra.gmra.mrb[0].mxu0 %vm334_vm0, %v1610_v0  ;;  %v250_v0 = vld [vmem:[%s1973_s1 + $0x20] sm:$0xff] }
  0x5a   : > { %1273 = vmatprep.mubr.msk.f32.mxu0 %vm334_vm0, %v247_v61 }
  0x5d   : > { %1274 = vmatmul.mubr.msk.f32.gmra.mrb[2].mxu0 %vm334_vm0, %v247_v61 }
  0x5e   : > { %1275 = vmatprep.mubr.msk.f32.mxu0 %vm334_vm0, %v248_v62 }
  0x61   : > { %1276 = vmatmul.mubr.msk.f32.gmra.mrb[4].mxu0 %vm334_vm0, %v248_v62 }
  0x62   : > { %1277 = vmatprep.mubr.msk.f32.mxu0 %vm334_vm0, %v249_v63 }
  0x65   : > { %1278 = vmatmul.mubr.msk.f32.gmra.mrb[6].mxu0 %vm334_vm0, %v249_v63 }
  0x66   : > { %1279 = vmatprep.mubr.msk.f32.mxu0 %vm334_vm0, %v250_v0 }
  0x69   : > { %1280 = vmatmul.mubr.msk.f32.gmra.mrb[8].mxu0 %vm334_vm0, %v250_v0 }
  0x6a   : > { %1281 = vmatprep.mubr.msk.f32.mxu0 %vm334_vm0, %v251_v1 }
  0x6d   : > { %1282 = vmatmul.mubr.msk.f32.gmra.mrb[10].mxu0 %vm334_vm0, %v251_v1 }
  0x6e   : > { %1283 = vmatprep.mubr.msk.f32.mxu0 %vm334_vm0, %v252_v2 }
  0x71   : > { %1284 = vmatmul.mubr.msk.f32.gmra.mrb[12].mxu0 %vm334_vm0, %v252_v2 }
  0x72   : > { %1285 = vmatprep.mubr.msk.f32.mxu0 %vm334_vm0, %v253_v3 }
  0x75   : > { %1286 = vmatmul.mubr.msk.f32.gmra.mrb[14].mxu0 %vm334_vm0, %v253_v3 }
  0x8b   : > { %v297_v5 = vpop.permute.xlu0 %296 }
  0x8c   : > { %v307_v14 = vpop.permute.xlu1 %306 }
  0x8f   : > { %v302_v9 = vpop.permute.xlu0 %301 }
  0x90   : > { %v312_v25 = vpop.permute.xlu1 %311 }
  0x93   : > { %v317_v38 = vpop.permute.xlu0 %316 }
  0x94   : > { %v322_v41 = vpop.permute.xlu1 %321 }
  0x97   : > { %v327_v54 = vpop.permute.xlu0 %326 }
  0x98   : > { %v332_v57 = vpop.permute.xlu1 %331 }
 0x12c   : > { %v521_v6 = vpop.f32.mrb[0].mxu0 }
 0x12d   : > { %v523_v7 = vpop.f32.mrb[1].mxu0  ;;  %v522_v8 = vadd.f32 %v521_v6, %v297_v5  ;;  %v584_v6 = vld [vmem:[%s1975_s3] sm:$0xff] }
 0x12e   : > { %v524_v10 = vadd.f32 %v523_v7, %v297_v5  ;;  %v585_v7 = vld [vmem:[%s1975_s3 + $0x8] sm:$0xff] }
 0x12f   : > { %v568_v16 = vmax.f32 %v522_v8, 0.0 }
 0x130   : > { %v527_v11 = vpop.f32.mrb[2].mxu0  ;;  %v569_v18 = vmax.f32 %v524_v10, 0.0  ;;  %v591_v10 = vpop.permute.xlu0 %590 }
 0x131   : > { %v528_v12 = vadd.f32 %v527_v11, %v302_v9  ;;  %v529_v13 = vpop.f32.mrb[3].mxu0  ;;  %v596_v11 = vpop.permute.xlu1 %595 }
 0x132   : > { %v530_v15 = vadd.f32 %v529_v13, %v302_v9 }
 0x133   : > { %v570_v17 = vmax.f32 %v528_v12, 0.0 }
 0x134   : > { %v571_v19 = vmax.f32 %v530_v15, 0.0  ;;  %v533_v20 = vpop.f32.mrb[4].mxu0 }
 0x135   : > { %v535_v21 = vpop.f32.mrb[5].mxu0  ;;  %v1337_v22 = vpack.c.bf16 %v570_v17, %v568_v16  ;;  %v534_v24 = vadd.f32 %v533_v20, %v307_v14 }
 0x136   : > { %v1335_v23 = vpack.c.bf16 %v571_v19, %v569_v18  ;;  %v536_v26 = vadd.f32 %v535_v21, %v307_v14 }
 0x137   : > { %v572_v31 = vmax.f32 %v534_v24, 0.0 }
 0x138   : > { %v539_v27 = vpop.f32.mrb[6].mxu0  ;;  %1336 = vmatprep.subr.bf16.mxu1 %v1335_v23  ;;  %v573_v33 = vmax.f32 %v536_v26, 0.0 }
 0x139   : > { %v540_v28 = vadd.f32 %v539_v27, %v312_v25  ;;  %v541_v29 = vpop.f32.mrb[7].mxu0  ;;  %1338 = vmatpush1.bf16.msra.mxu1 %v1337_v22 }
 0x13a   : > { %v542_v30 = vadd.f32 %v541_v29, %v312_v25 }
 0x13b   : > { %v574_v32 = vmax.f32 %v540_v28, 0.0 }
 0x13c   : > { %v575_v34 = vmax.f32 %v542_v30, 0.0  ;;  %v545_v35 = vpop.f32.mrb[8].mxu0 }
 0x13d   : > { %v1341_v36 = vpack.c.bf16 %v574_v32, %v572_v31  ;;  %v547_v37 = vpop.f32.mrb[9].mxu0  ;;  %v546_v40 = vadd.f32 %v545_v35, %v317_v38 }
 0x13e   : > { %v1339_v39 = vpack.c.bf16 %v575_v34, %v573_v33  ;;  %v548_v42 = vadd.f32 %v547_v37, %v317_v38 }
 0x13f   : > { %v576_v47 = vmax.f32 %v546_v40, 0.0 }
 0x140   : > { %v551_v43 = vpop.f32.mrb[10].mxu0  ;;  %1340 = vmatprep.subr.bf16.mxu1 %v1339_v39  ;;  %v577_v49 = vmax.f32 %v548_v42, 0.0 }
 0x141   : > { %v552_v44 = vadd.f32 %v551_v43, %v322_v41  ;;  %v553_v45 = vpop.f32.mrb[11].mxu0  ;;  %1342 = vmatpush1.bf16.msra.mxu1 %v1341_v36 }
 0x142   : > { %v554_v46 = vadd.f32 %v553_v45, %v322_v41 }
 0x143   : > { %v578_v48 = vmax.f32 %v552_v44, 0.0 }
 0x144   : > { %v579_v50 = vmax.f32 %v554_v46, 0.0  ;;  %v557_v51 = vpop.f32.mrb[12].mxu0 }
 0x145   : > { %v1345_v52 = vpack.c.bf16 %v578_v48, %v576_v47  ;;  %v559_v53 = vpop.f32.mrb[13].mxu0  ;;  %v558_v56 = vadd.f32 %v557_v51, %v327_v54 }
 0x146   : > { %v1343_v55 = vpack.c.bf16 %v579_v50, %v577_v49  ;;  %v560_v58 = vadd.f32 %v559_v53, %v327_v54 }
 0x147   : > { %v580_v63 = vmax.f32 %v558_v56, 0.0 }
 0x148   : > { %v563_v59 = vpop.f32.mrb[14].mxu0  ;;  %1344 = vmatprep.subr.bf16.mxu1 %v1343_v55  ;;  %v581_v1 = vmax.f32 %v560_v58, 0.0 }
 0x149   : > { %v564_v60 = vadd.f32 %v563_v59, %v332_v57  ;;  %v565_v61 = vpop.f32.mrb[15].mxu0  ;;  %1346 = vmatpush1.bf16.msra.mxu1 %v1345_v52 }
 0x14a   : > { %v566_v62 = vadd.f32 %v565_v61, %v332_v57 }
 0x14b   : > { %v582_v0 = vmax.f32 %v564_v60, 0.0 }
 0x14c   : > { %v583_v2 = vmax.f32 %v566_v62, 0.0 }
 0x14d   : > { %v1349_v3 = vpack.c.bf16 %v582_v0, %v580_v63 }
 0x14e   : > { %v1347_v5 = vpack.c.bf16 %v583_v2, %v581_v1 }
 0x150   : > { %1348 = vmatprep.subr.bf16.mxu1 %v1347_v5 }
 0x151   : > { %1350 = vmatpush1.bf16.msra.mxu1 %v1349_v3 }
 0x154   : > { %1217 = vmatmul.mubr.msk.f32.vlgmr.msra.gmra.mrb[0].mxu1 %vm598_vm2, %v584_v6 }
 0x155   : > { %675 = vmatprep.mubr.f32.mxu1 %v1544_v4 }
 0x158   : > { %1218 = vmatmul.mubr.msk.f32.gmra.mrb[2].mxu1 %vm598_vm2, %v585_v7 }
 0x227   : > { %v671_v8 = vpop.f32.mrb[0].mxu1 }
 0x228   : > { %v673_v9 = vpop.f32.mrb[1].mxu1  ;;  %v672_v13 = vadd.f32 %v671_v8, %v591_v10 }
 0x229   : > { %v674_v16 = vadd.f32 %v673_v9, %v591_v10 }
 0x22b   : > { %v677_v12 = vpop.f32.mrb[2].mxu1 }
 0x22c   : > { %v678_v14 = vadd.f32 %v677_v12, %v596_v11  ;;  %v679_v15 = vpop.f32.mrb[3].mxu1 }
 0x22d   : > { %v680_v17 = vadd.f32 %v679_v15, %v596_v11 }
 0x22e   : > { %v682_v18 = vmax.f32 %v672_v13, %v678_v14 }
 0x22f   : > { %v689_v19 = vmax.f32 %v674_v16, %v680_v17 }
 0x230   : > { %v683_v20 = vrot.slane %v682_v18, 4 }
 0x231   : > { %v690_v21 = vrot.slane %v689_v19, 4 }
 0x232   : > { %v684_v4 = vmax.f32 %v682_v18, %v683_v20 }
 0x233   : > { %v691_v22 = vmax.f32 %v689_v19, %v690_v21 }
 0x234   : > { %v685_v23 = vrot.slane %v684_v4, 2 }
 0x235   : > { %v692_v24 = vrot.slane %v691_v22, 2 }
 0x236   : > { %v686_v25 = vmax.f32 %v684_v4, %v685_v23 }
 0x237   : > { %v693_v26 = vmax.f32 %v691_v22, %v692_v24 }
 0x238   : > { %v687_v27 = vrot.slane %v686_v25, 1 }
 0x239   : > { %v694_v28 = vrot.slane %v693_v26, 1 }
 0x23a   : > { %v688_v29 = vmax.f32 %v686_v25, %v687_v27 }
 0x23b   : > { %v695_v30 = vmax.f32 %v693_v26, %v694_v28 }
 0x23c   : > { %v696_v31 = vsub.f32 %v672_v13, %v688_v29  ;;  %v698_v32 = vsub.f32 %v678_v14, %v688_v29 }
 0x23d   : > { %v697_v33 = vsub.f32 %v674_v16, %v695_v30  ;;  %v699_v34 = vsub.f32 %v680_v17, %v695_v30 }
 0x23e   : > { %v700_v35 = vmul.f32 1.442695, %v696_v31  ;;  %v704_v36 = vmul.f32 1.442695, %v698_v32 }
 0x23f   : > { %v702_v37 = vmul.f32 1.442695, %v697_v33  ;;  %v706_v38 = vmul.f32 1.442695, %v699_v34 }
 0x240   : > { %1443 = vpow2.f32 %v700_v35 }
 0x241   : > { %1445 = vpow2.f32 %v704_v36 }
 0x242   : > { %1447 = vpow2.f32 %v702_v37 }
 0x243   : > { %1449 = vpow2.f32 %v706_v38 }
 0x24a   : > { %v1444_v39 = vpop.eup %1443 }
 0x24b   : > { %v1446_v40 = vpop.eup %1445 }
 0x24c   : > { %v1448_v41 = vpop.eup %1447  ;;  %v708_v42 = vadd.f32 %v1446_v40, %v1444_v39 }
 0x24d   : > { %v1450_v43 = vpop.eup %1449 }
 0x24e   : > { %v715_v44 = vadd.f32 %v1450_v43, %v1448_v41  ;;  %v709_v45 = vrot.slane %v708_v42, 4 }
 0x250   : > { %v710_v46 = vadd.f32 %v709_v45, %v708_v42  ;;  %v716_v47 = vrot.slane %v715_v44, 4 }
 0x252   : > { %v711_v48 = vrot.slane %v710_v46, 2  ;;  %v717_v49 = vadd.f32 %v716_v47, %v715_v44 }
 0x254   : > { %v712_v50 = vadd.f32 %v711_v48, %v710_v46  ;;  %v718_v51 = vrot.slane %v717_v49, 2 }
 0x256   : > { %v713_v52 = vrot.slane %v712_v50, 1  ;;  %v719_v53 = vadd.f32 %v718_v51, %v717_v49 }
 0x258   : > { %v714_v54 = vadd.f32 %v713_v52, %v712_v50  ;;  %v720_v55 = vrot.slane %v719_v53, 1 }
 0x25a   : > { %1451 = vrcp.f32 %v714_v54  ;;  %v721_v56 = vadd.f32 %v720_v55, %v719_v53 }
 0x25c   : > { %1453 = vrcp.f32 %v721_v56 }
 0x264   : > { %v1452_v57 = vpop.eup %1451 }
 0x265   : > { %v724_v58 = vmul.f32 %v1452_v57, %v714_v54 }
 0x266   : > { %v1454_v59 = vpop.eup %1453 }
 0x267   : > { %v726_v60 = vsub.f32 2.0, %v724_v58  ;;  %v725_v61 = vmul.f32 %v1454_v59, %v721_v56 }
 0x269   : > { %v728_v62 = vmul.f32 %v1452_v57, %v726_v60  ;;  %v727_v63 = vsub.f32 2.0, %v725_v61 }
 0x26b   : > { %v730_v0 = vmul.f32 %v1444_v39, %v728_v62  ;;  %v729_v1 = vmul.f32 %v1454_v59, %v727_v63  ;;  %v732_v2 = vmul.f32 %v1446_v40, %v728_v62 }
 0x26d   : > { %734 = vxpose.xlu0.b32.start [1/2] (short) %v730_v0, 128  ;;  %v731_v3 = vmul.f32 %v1448_v41, %v729_v1  ;;  %v733_v5 = vmul.f32 %v1450_v43, %v729_v1 }
 0x26f   : > { %766 = vxpose.xlu1.b32.start [1/2] (short) %v731_v3, 128 }
 0x271   : > { %735 = vxpose.xlu0.b32.end [2/2] (short) %v732_v2, 128 }
 0x273   : > { %767 = vxpose.xlu1.b32.end [2/2] (short) %v733_v5, 128 }
 0x2ed   : > { %v750_v6 = vpop.trf.xlu0 }
 0x2ee   : > { %799 = vst.msk [vmem:[%s1767_s14] sm:$0xff] %vm798_vm3, %v750_v6 }
 0x2ef   : > { %v782_v7 = vpop.trf.xlu1 }
 0x2f0   : > { %815 = vst.msk [vmem:[%s1767_s14 + $0x80] sm:$0xff] %vm798_vm3, %v782_v7 }
 0x2f1   : > { %v751_v8 = vpop.trf.xlu0 }
 0x2f2   : > { %800 = vst.msk [vmem:[%s1767_s14 + $0x8] sm:$0xff] %vm798_vm3, %v751_v8 }
 0x2f3   : > { %v783_v9 = vpop.trf.xlu1 }
 0x2f4   : > { %816 = vst.msk [vmem:[%s1767_s14 + $0x88] sm:$0xff] %vm798_vm3, %v783_v9 }
 0x2f5   : > { %v752_v10 = vpop.trf.xlu0 }
 0x2f6   : > { %801 = vst.msk [vmem:[%s1767_s14 + $0x10] sm:$0xff] %vm798_vm3, %v752_v10 }
 0x2f7   : > { %v784_v11 = vpop.trf.xlu1 }
 0x2f8   : > { %817 = vst.msk [vmem:[%s1767_s14 + $0x90] sm:$0xff] %vm798_vm3, %v784_v11 }
 0x2f9   : > { %v753_v12 = vpop.trf.xlu0 }
 0x2fa   : > { %802 = vst.msk [vmem:[%s1767_s14 + $0x18] sm:$0xff] %vm798_vm3, %v753_v12 }
 0x2fb   : > { %v785_v13 = vpop.trf.xlu1 }
 0x2fc   : > { %818 = vst.msk [vmem:[%s1767_s14 + $0x98] sm:$0xff] %vm798_vm3, %v785_v13 }
 0x2fd   : > { %v754_v14 = vpop.trf.xlu0 }
 0x2fe   : > { %803 = vst.msk [vmem:[%s1767_s14 + $0x20] sm:$0xff] %vm798_vm3, %v754_v14 }
 0x2ff   : > { %v786_v15 = vpop.trf.xlu1 }
 0x300   : > { %819 = vst.msk [vmem:[%s1767_s14 + $0xa0] sm:$0xff] %vm798_vm3, %v786_v15 }
 0x301   : > { %v755_v16 = vpop.trf.xlu0 }
 0x302   : > { %804 = vst.msk [vmem:[%s1767_s14 + $0x28] sm:$0xff] %vm798_vm3, %v755_v16 }
 0x303   : > { %v787_v17 = vpop.trf.xlu1 }
 0x304   : > { %820 = vst.msk [vmem:[%s1767_s14 + $0xa8] sm:$0xff] %vm798_vm3, %v787_v17 }
 0x305   : > { %v756_v18 = vpop.trf.xlu0 }
 0x306   : > { %805 = vst.msk [vmem:[%s1767_s14 + $0x30] sm:$0xff] %vm798_vm3, %v756_v18 }
 0x307   : > { %v788_v19 = vpop.trf.xlu1 }
 0x308   : > { %821 = vst.msk [vmem:[%s1767_s14 + $0xb0] sm:$0xff] %vm798_vm3, %v788_v19 }
 0x309   : > { %v757_v20 = vpop.trf.xlu0 }
 0x30a   : > { %806 = vst.msk [vmem:[%s1767_s14 + $0x38] sm:$0xff] %vm798_vm3, %v757_v20 }
 0x30b   : > { %v789_v21 = vpop.trf.xlu1 }
 0x30c   : > { %822 = vst.msk [vmem:[%s1767_s14 + $0xb8] sm:$0xff] %vm798_vm3, %v789_v21 }
 0x30d   : > { %v758_v4 = vpop.trf.xlu0 }
 0x30e   : > { %807 = vst.msk [vmem:[%s1767_s14 + $0x40] sm:$0xff] %vm798_vm3, %v758_v4 }
 0x30f   : > { %v790_v22 = vpop.trf.xlu1 }
 0x310   : > { %823 = vst.msk [vmem:[%s1767_s14 + $0xc0] sm:$0xff] %vm798_vm3, %v790_v22 }
 0x311   : > { %v759_v23 = vpop.trf.xlu0 }
 0x312   : > { %808 = vst.msk [vmem:[%s1767_s14 + $0x48] sm:$0xff] %vm798_vm3, %v759_v23 }
 0x313   : > { %v791_v24 = vpop.trf.xlu1 }
 0x314   : > { %824 = vst.msk [vmem:[%s1767_s14 + $0xc8] sm:$0xff] %vm798_vm3, %v791_v24 }
 0x315   : > { %v760_v25 = vpop.trf.xlu0 }
 0x316   : > { %809 = vst.msk [vmem:[%s1767_s14 + $0x50] sm:$0xff] %vm798_vm3, %v760_v25 }
 0x317   : > { %v792_v26 = vpop.trf.xlu1 }
 0x318   : > { %825 = vst.msk [vmem:[%s1767_s14 + $0xd0] sm:$0xff] %vm798_vm3, %v792_v26 }
 0x319   : > { %v761_v27 = vpop.trf.xlu0 }
 0x31a   : > { %810 = vst.msk [vmem:[%s1767_s14 + $0x58] sm:$0xff] %vm798_vm3, %v761_v27 }
 0x31b   : > { %v793_v28 = vpop.trf.xlu1 }
 0x31c   : > { %826 = vst.msk [vmem:[%s1767_s14 + $0xd8] sm:$0xff] %vm798_vm3, %v793_v28 }
 0x31d   : > { %v762_v29 = vpop.trf.xlu0 }
 0x31e   : > { %811 = vst.msk [vmem:[%s1767_s14 + $0x60] sm:$0xff] %vm798_vm3, %v762_v29 }
 0x31f   : > { %v794_v30 = vpop.trf.xlu1 }
 0x320   : > { %827 = vst.msk [vmem:[%s1767_s14 + $0xe0] sm:$0xff] %vm798_vm3, %v794_v30 }
 0x321   : > { %v763_v31 = vpop.trf.xlu0 }
 0x322   : > { %812 = vst.msk [vmem:[%s1767_s14 + $0x68] sm:$0xff] %vm798_vm3, %v763_v31 }
 0x323   : > { %v795_v32 = vpop.trf.xlu1 }
 0x324   : > { %828 = vst.msk [vmem:[%s1767_s14 + $0xe8] sm:$0xff] %vm798_vm3, %v795_v32 }
 0x325   : > { %v764_v33 = vpop.trf.xlu0 }
 0x326   : > { %813 = vst.msk [vmem:[%s1767_s14 + $0x70] sm:$0xff] %vm798_vm3, %v764_v33  ;;  %837 = sbr.rel (!%p1600_p4) target bundleno = 869 (0x365), region = 44 }
 0x327   : > { %v796_v34 = vpop.trf.xlu1 }
 0x328   : > { %829 = vst.msk [vmem:[%s1767_s14 + $0xf0] sm:$0xff] %vm798_vm3, %v796_v34 }
 0x329   : > { %v765_v35 = vpop.trf.xlu0 }
 0x32a   : > { %814 = vst.msk [vmem:[%s1767_s14 + $0x78] sm:$0xff] %vm798_vm3, %v765_v35 }
 0x32b   : > { %v797_v36 = vpop.trf.xlu1 }
 0x32c   : > { %830 = vst.msk [vmem:[%s1767_s14 + $0xf8] sm:$0xff] %vm798_vm3, %v797_v36 }
 0x32d   : > { %s1990_s18 = smov (!%p840_p8, %s839_s18), 32 }
 0x32e   : > { %s1221_s23 = sshll.u32 %s1990_s18, 7 }
 0x32f   : > { %p1224_p9 = scmp.eq.s32.totalorder %s1221_s23, 0 }
 0x330   : > { %s1846_s24 = sshrl.u32 (!%p1224_p9), %s1990_s18, 5 }
 0x331   : > { %848 = sbr.rel (%p1224_p9) target bundleno = 869 (0x365), region = 48  ;;  %p1225_p10 = scmp.le.s32.totalorder (!%p1224_p9), %s1846_s24, 0 }
 0x338   : > { %1126 = sbr.rel (%p1225_p10) target bundleno = 848 (0x350), region = 124  ;;  %s1981_s21 = smov (!%p1225_p10), %s1840_s20 }
 0x339   : > { %s1982_s26 = smov (!%p1225_p10), %s1767_s14  ;;  %s1855_s27 = smov (!%p1225_p10), 0  }
 0x33a   : > { %s1857_s28 = smov (!%p1225_p10), 0  }
 0x33f LB: >> { %v972_v37 = vld [vmem:[%s1517_s26] sm:$0xff]  ;;  %v974_v38 = vld [vmem:[%s1517_s26 + $0x8] sm:$0xff]  ;;  %v976_v39 = vld [vmem:[%s1517_s26 + $0x10] sm:$0xff]  ;;  %s1036_s29 = sadd.s32 1, %s1521_s27  ;;  %s966_s28 = sadd.s32 1, %s1525_s28   ;;  %s1525_s28 = sphi %s1857_s28, %s966_s28   ;;  %s1521_s27 = sphi %s1855_s27, %s1985_s27   ;;  %s1517_s26 = sphi %s1982_s26, %s1984_s26   ;;  %s1513_s21 = sphi %s1981_s21, %s1983_s21  }
 0x340   : >> { %973 = vst [vmem:[%s1513_s21] sm:$0xff] %v972_v37  ;;  %975 = vst [vmem:[%s1513_s21 + $0x8] sm:$0xff] %v974_v38  ;;  %v978_v40 = vld [vmem:[%s1517_s26 + $0x18] sm:$0xff]  ;;  %v980_v41 = vld [vmem:[%s1517_s26 + $0x20] sm:$0xff]  ;;  %p1037_p11 = scmp.ge.s32.totalorder %s1036_s29, %s1846_s24  ;;  %p965_p12 = scmp.ge.s32.totalorder %s966_s28, %s1846_s24 }
 0x341   : >> { %977 = vst [vmem:[%s1513_s21 + $0x10] sm:$0xff] %v976_v39  ;;  %v982_v42 = vld [vmem:[%s1517_s26 + $0x28] sm:$0xff]  ;;  %979 = vst [vmem:[%s1513_s21 + $0x18] sm:$0xff] %v978_v40  ;;  %v984_v43 = vld [vmem:[%s1517_s26 + $0x30] sm:$0xff] }
 0x342   : >> { %981 = vst [vmem:[%s1513_s21 + $0x20] sm:$0xff] %v980_v41  ;;  %983 = vst [vmem:[%s1513_s21 + $0x28] sm:$0xff] %v982_v42  ;;  %v986_v44 = vld [vmem:[%s1517_s26 + $0x38] sm:$0xff]  ;;  %v988_v45 = vld [vmem:[%s1517_s26 + $0x40] sm:$0xff]  ;;  %s1992_s29 = smov (%p1037_p11, %s1036_s29), 0 }
 0x343   : >> { %985 = vst [vmem:[%s1513_s21 + $0x30] sm:$0xff] %v984_v43  ;;  %987 = vst [vmem:[%s1513_s21 + $0x38] sm:$0xff] %v986_v44  ;;  %v990_v46 = vld [vmem:[%s1517_s26 + $0x48] sm:$0xff]  ;;  %v992_v47 = vld [vmem:[%s1517_s26 + $0x50] sm:$0xff]  ;;  %s1226_s30 = sshll.u32 %s1992_s29, 8  ;;  %s1985_s27 = smov %s1992_s29 }
 0x344   : >> { %989 = vst [vmem:[%s1513_s21 + $0x40] sm:$0xff] %v988_v45  ;;  %v994_v48 = vld [vmem:[%s1517_s26 + $0x58] sm:$0xff]  ;;  %991 = vst [vmem:[%s1513_s21 + $0x48] sm:$0xff] %v990_v46  ;;  %v996_v49 = vld [vmem:[%s1517_s26 + $0x60] sm:$0xff]  ;;  %s1913_s6 = scalar_lea.vmem %s1767_s14, %s1226_s30 [#allocation2]   ;;  %s1042_s7 = scalar_lea.vmem %s1840_s20, %s1226_s30  }
 0x345   : >> { %993 = vst [vmem:[%s1513_s21 + $0x50] sm:$0xff] %v992_v47  ;;  %995 = vst [vmem:[%s1513_s21 + $0x58] sm:$0xff] %v994_v48  ;;  %v998_v50 = vld [vmem:[%s1517_s26 + $0x68] sm:$0xff]  ;;  %v1000_v51 = vld [vmem:[%s1517_s26 + $0x70] sm:$0xff] }
 0x346   : >> { %997 = vst [vmem:[%s1513_s21 + $0x60] sm:$0xff] %v996_v49  ;;  %999 = vst [vmem:[%s1513_s21 + $0x68] sm:$0xff] %v998_v50  ;;  %v1002_v52 = vld [vmem:[%s1517_s26 + $0x78] sm:$0xff]  ;;  %v1004_v53 = vld [vmem:[%s1517_s26 + $0x80] sm:$0xff] }
 0x347   : >> { %1001 = vst [vmem:[%s1513_s21 + $0x70] sm:$0xff] %v1000_v51  ;;  %v1006_v54 = vld [vmem:[%s1517_s26 + $0x88] sm:$0xff]  ;;  %1003 = vst [vmem:[%s1513_s21 + $0x78] sm:$0xff] %v1002_v52  ;;  %v1008_v55 = vld [vmem:[%s1517_s26 + $0x90] sm:$0xff] }
 0x348   : >> { %1005 = vst [vmem:[%s1513_s21 + $0x80] sm:$0xff] %v1004_v53  ;;  %1007 = vst [vmem:[%s1513_s21 + $0x88] sm:$0xff] %v1006_v54  ;;  %v1010_v56 = vld [vmem:[%s1517_s26 + $0x98] sm:$0xff]  ;;  %v1012_v57 = vld [vmem:[%s1517_s26 + $0xa0] sm:$0xff] }
 0x349   : >> { %1009 = vst [vmem:[%s1513_s21 + $0x90] sm:$0xff] %v1008_v55  ;;  %1011 = vst [vmem:[%s1513_s21 + $0x98] sm:$0xff] %v1010_v56  ;;  %v1014_v58 = vld [vmem:[%s1517_s26 + $0xa8] sm:$0xff]  ;;  %v1016_v59 = vld [vmem:[%s1517_s26 + $0xb0] sm:$0xff]  ;;  %968 = sbr.rel (!%p965_p12) target bundleno = 831 (0x33f), region = 130 }
 0x34a   : >> { %1013 = vst [vmem:[%s1513_s21 + $0xa0] sm:$0xff] %v1012_v57  ;;  %v1018_v60 = vld [vmem:[%s1517_s26 + $0xb8] sm:$0xff]  ;;  %1015 = vst [vmem:[%s1513_s21 + $0xa8] sm:$0xff] %v1014_v58  ;;  %v1020_v61 = vld [vmem:[%s1517_s26 + $0xc0] sm:$0xff] }
 0x34b   : >> { %1017 = vst [vmem:[%s1513_s21 + $0xb0] sm:$0xff] %v1016_v59  ;;  %1019 = vst [vmem:[%s1513_s21 + $0xb8] sm:$0xff] %v1018_v60  ;;  %v1022_v62 = vld [vmem:[%s1517_s26 + $0xc8] sm:$0xff]  ;;  %v1024_v63 = vld [vmem:[%s1517_s26 + $0xd0] sm:$0xff] }
 0x34c   : >> { %1021 = vst [vmem:[%s1513_s21 + $0xc0] sm:$0xff] %v1020_v61  ;;  %1023 = vst [vmem:[%s1513_s21 + $0xc8] sm:$0xff] %v1022_v62  ;;  %v1026_v0 = vld [vmem:[%s1517_s26 + $0xd8] sm:$0xff]  ;;  %v1028_v1 = vld [vmem:[%s1517_s26 + $0xe0] sm:$0xff] }
 0x34d   : >> { %1025 = vst [vmem:[%s1513_s21 + $0xd0] sm:$0xff] %v1024_v63  ;;  %v1030_v2 = vld [vmem:[%s1517_s26 + $0xe8] sm:$0xff]  ;;  %1027 = vst [vmem:[%s1513_s21 + $0xd8] sm:$0xff] %v1026_v0  ;;  %v1032_v3 = vld [vmem:[%s1517_s26 + $0xf0] sm:$0xff] }
 0x34e   : >> { %1029 = vst [vmem:[%s1513_s21 + $0xe0] sm:$0xff] %v1028_v1  ;;  %1031 = vst [vmem:[%s1513_s21 + $0xe8] sm:$0xff] %v1030_v2  ;;  %v1034_v5 = vld [vmem:[%s1517_s26 + $0xf8] sm:$0xff]  ;;  %s1984_s26 = smov %s1913_s6 }
 0x34f   : >> { %1033 = vst [vmem:[%s1513_s21 + $0xf0] sm:$0xff] %v1032_v3  ;;  %1035 = vst [vmem:[%s1513_s21 + $0xf8] sm:$0xff] %v1034_v5  ;;  %s1983_s21 = smov %s1042_s7 }
 0x350 PF: > { %s1954_s8 = sand.u32 31, %s1990_s18   ;;  %s1237_s9 = sshll.u32 %s1846_s24, 8 }
 0x351   : > { %s1047_s10 = scalar_lea.vmem %s1767_s14, %s1237_s9 [#allocation2]   ;;  %s1049_s11 = scalar_lea.vmem %s1840_s20, %s1237_s9  }
 0x352   : > { %p1231_p13 = scmp.le.s32.totalorder %s1954_s8, 0 }
 0x353   : > { %s1527_s12 = smov (!%p1231_p13), %s1049_s11   ;;  %s1531_s13 = smov (!%p1231_p13), %s1047_s10  }
 0x354   : > { %1140 = sbr.rel (%p1231_p13) target bundleno = 869 (0x365), region = 135  ;;  %s1535_s15 = smov (!%p1231_p13), 0  }
 0x355   : > { %s1539_s16 = smov (!%p1231_p13), 0  }
 0x35b LB: >> { %v1059_v6 = vld [vmem:[%s1533_s13] sm:$0xff]  ;;  %s1061_s18 = sadd.s32 1, %s1537_s15  ;;  %s1053_s16 = sadd.s32 1, %s1541_s16   ;;  %s1541_s16 = sphi %s1539_s16, %s1053_s16   ;;  %s1537_s15 = sphi %s1535_s15, %s1536_s15   ;;  %s1533_s13 = sphi %s1531_s13, %s1066_s13   ;;  %s1529_s12 = sphi %s1527_s12, %s1067_s12  }
 0x35c   : >> { %1060 = vst [vmem:[%s1529_s12] sm:$0xff] %v1059_v6  ;;  %p1062_p0 = scmp.ge.s32.totalorder %s1061_s18, %s1954_s8  ;;  %p1052_p1 = scmp.ge.s32.totalorder %s1053_s16, %s1954_s8 }
 0x35e   : >> { %s1994_s18 = smov (%p1062_p0, %s1061_s18), 0  ;;  %1055 = sbr.rel (!%p1052_p1) target bundleno = 859 (0x35b), region = 141 }
 0x35f   : >> { %s1232_s14 = sshll.u32 %s1994_s18, 3  ;;  %s1536_s15 = smov %s1994_s18  }
 0x360   : >> { %s1066_s13 = scalar_lea.vmem %s1047_s10, %s1232_s14 [#allocation2]   ;;  %s1067_s12 = scalar_lea.vmem %s1049_s11, %s1232_s14  }
 0x365 PF: > { %p12_p2 = scmp.ge.s32.totalorder %s1590_s22, 4   ;;  %s1986_s18 = smov %s1505_s19 }
 0x366   : > { %s1987_s19 = smov %s1598_s25  ;;  %s1988_s20 = smov %s1590_s22 }
 0x367   :  { %14 = sbr.rel (!%p12_p2) target bundleno = 2 (0x2), region = 152 }

</bundles_post_ra>
